<compile_context>
chip_gen: v5e
topology: v5e:2x2
jax: 0.10.0
libtpu: 0.0.40
codegen_flags: <defaults>
</compile_context>

<pallas_src>
import functools

import jax
import jax.numpy as jnp
from jax.experimental import pallas as pl
from jax.experimental.pallas import tpu as pltpu


def _lrn3d_kernel(C,
                  x1_ref, x2_ref, w_ref, b_ref, mwt_ref, mb_ref,
                  logits_ref, sse_ref):
    # Per grid step (one sample, both TCs busy on v7x via "parallel" grid):
    #   x1_ref / x2_ref : (C, S)   lane-dense pixel slabs
    #   w_ref           : (3C, 2C) block-diagonal packed conv weights
    #   b_ref           : (3C, 1)  packed conv biases
    #   mwt_ref         : (C, N)   mlp weight, transposed
    #   mb_ref          : (1, N)   mlp bias
    x1 = x1_ref[...]
    x2 = x2_ref[...]

    # Stack the two activation slabs along channels -> single K=2C MXU push.
    xx = jnp.concatenate([x1, x2], axis=0)                       # (2C, S)
    y = jnp.dot(w_ref[...], xx, preferred_element_type=jnp.float32)  # (3C, S)
    y = jnp.maximum(y + b_ref[...], 0.0)

    f1 = y[0:C, :]          # relu(conv1(x1))
    fw = y[C:2 * C, :]      # relu(weight_conv(x1))
    f2 = y[2 * C:3 * C, :]  # relu(conv2(x2))

    # Per-sample partial sum of squared differences (combined on host).
    d = f1 - f2
    sse = jnp.sum(d * d, keepdims=True)                          # (1, 1)
    sse_ref[...] = sse[None]                                     # (1, 1, 1)

    # AdaptiveMaxPool3d((1,1,1)) over this sample's S pixels -> stays in vregs.
    pooled = jnp.max(fw, axis=1, keepdims=True)                  # (C, 1)

    # mlp: Linear(C -> N) on the pooled vector.  Tiny, so do it on the VPU
    # (multiply + cross-sublane reduce) -- exact f32, no MXU round trip.
    logits = jnp.sum(mwt_ref[...] * pooled, axis=0, keepdims=True)  # (1, N)
    logits = logits + mb_ref[...]
    logits_ref[...] = logits[None]                               # (1, 1, N)


def lrn3d_forward(x1, x2, params):
    """Pallas LRN3D forward.  Returns (mlp_out (B, N), mse scalar)."""
    B, C, T, H, W = x1.shape
    S = T * H * W
    N = params["mlp_w"].shape[0]

    # Alignment assumptions for the lane-dense layout (see review notes).
    assert C % 8 == 0, f"C={C} must be a multiple of 8 (f32 sublane tile)"
    assert S % 128 == 0, f"S={S} must be a multiple of 128 (lane tile)"

    # Free views, no transpose / extra HBM pass.
    x1r = x1.reshape(B, C, S)
    x2r = x2.reshape(B, C, S)

    # Block-diagonal packed conv weights (3C, 2C):
    #   rows [0,  C): conv1   -> columns [0, C)  (acts on x1)
    #   rows [C, 2C): weight  -> columns [0, C)  (acts on x1)
    #   rows [2C,3C): conv2   -> columns [C, 2C) (acts on x2)
    zeros = jnp.zeros((C, C), jnp.float32)
    w1 = params["conv1_w"].reshape(C, C)
    ww = params["weight_w"].reshape(C, C)
    w2 = params["conv2_w"].reshape(C, C)
    w_all = jnp.concatenate(
        [jnp.concatenate([w1, zeros], axis=1),
         jnp.concatenate([ww, zeros], axis=1),
         jnp.concatenate([zeros, w2], axis=1)], axis=0)           # (3C, 2C)
    b_all = jnp.concatenate(
        [params["conv1_b"], params["weight_b"],
         params["conv2_b"]]).reshape(3 * C, 1)                    # (3C, 1)
    mw_t = params["mlp_w"].T                                      # (C, N)
    mb = params["mlp_b"].reshape(1, N)                            # (1, N)

    flops = 2 * (3 * C) * (2 * C) * S * B + 2 * C * N * B
    bytes_accessed = 4 * (2 * B * C * S                 # activations
                          + 3 * C * 2 * C + 3 * C       # conv weights/biases
                          + C * N + N                   # mlp weights/bias
                          + B * N + B)                  # outputs
    cost = pl.CostEstimate(flops=flops, transcendentals=0,
                           bytes_accessed=bytes_accessed)

    kernel = functools.partial(_lrn3d_kernel, C)
    logits, sse = pl.pallas_call(
        kernel,
        grid=(B,),
        in_specs=[
            pl.BlockSpec((pl.Squeezed(), C, S), lambda b: (b, 0, 0)),  # x1
            pl.BlockSpec((pl.Squeezed(), C, S), lambda b: (b, 0, 0)),  # x2
            pl.BlockSpec((3 * C, 2 * C), lambda b: (0, 0)),            # w_all
            pl.BlockSpec((3 * C, 1), lambda b: (0, 0)),                # b_all
            pl.BlockSpec((C, N), lambda b: (0, 0)),                    # mlp_w.T
            pl.BlockSpec((1, N), lambda b: (0, 0)),                    # mlp_b
        ],
        out_specs=(
            pl.BlockSpec((1, 1, N), lambda b: (b, 0, 0)),              # logits
            pl.BlockSpec((1, 1, 1), lambda b: (b, 0, 0)),              # sse
        ),
        out_shape=(jax.ShapeDtypeStruct((B, 1, N), jnp.float32),
                   jax.ShapeDtypeStruct((B, 1, 1), jnp.float32)),
        compiler_params=pltpu.CompilerParams(
            dimension_semantics=("parallel",),          # v7x: shard B over 2 TCs
            vmem_limit_bytes=32 * 1024 * 1024),
        cost_estimate=cost,
    )(x1r, x2r, w_all, b_all, mw_t, mb)

    mlp_out = logits.reshape(B, N)                      # free reshape, no .T
    mse = jnp.sum(sse) * (1.0 / float(B * C * S))       # tiny host-side combine
    return mlp_out, mse


# ------------------------- deterministic parameter init -------------------------
def init_lrn3d_params(key, C, N):
    ks = jax.random.split(key, 8)
    s = 0.1
    return {
        "conv1_w": jax.random.normal(ks[0], (C, C, 1, 1, 1), jnp.float32) * s,
        "conv1_b": jax.random.normal(ks[1], (C,), jnp.float32) * s,
        "conv2_w": jax.random.normal(ks[2], (C, C, 1, 1, 1), jnp.float32) * s,
        "conv2_b": jax.random.normal(ks[3], (C,), jnp.float32) * s,
        "weight_w": jax.random.normal(ks[4], (C, C, 1, 1, 1), jnp.float32) * s,
        "weight_b": jax.random.normal(ks[5], (C,), jnp.float32) * s,
        "mlp_w": jax.random.normal(ks[6], (N, C), jnp.float32) * s,
        "mlp_b": jax.random.normal(ks[7], (N,), jnp.float32) * s,
    }


# ------------------------------ pure-JAX reference ------------------------------
def lrn3d_ref(x1, x2, p):
    B, C = x1.shape[0], x1.shape[1]

    def conv1x1x1_relu(x, w, bias):
        w2 = w.reshape(C, C)
        y = jnp.einsum("oc,bcthw->bothw", w2, x) + bias.reshape(1, C, 1, 1, 1)
        return jax.nn.relu(y)

    F1 = conv1x1x1_relu(x1, p["conv1_w"], p["conv1_b"])
    F2 = conv1x1x1_relu(x2, p["conv2_w"], p["conv2_b"])
    Fw = conv1x1x1_relu(x1, p["weight_w"], p["weight_b"])
    pooled = jnp.max(Fw.reshape(B, C, -1), axis=-1)       # AdaptiveMaxPool3d((1,1,1))
    mlp_out = pooled @ p["mlp_w"].T + p["mlp_b"]          # (B, N)
    mse = jnp.mean((F1 - F2) ** 2)                        # nn.MSELoss()
    return mlp_out, mse


# ------------------------------------ main ------------------------------------
if __name__ == "__main__":
    B, C, T, H, W = 2, 8, 4, 8, 8      # S = T*H*W = 256 pixels per sample
    NUM_CLASSES = 10

    root = jax.random.PRNGKey(0)
    kp, kx1, kx2 = jax.random.split(root, 3)
    params = init_lrn3d_params(kp, C, NUM_CLASSES)
    x1 = jax.random.normal(kx1, (B, C, T, H, W), jnp.float32)
    x2 = jax.random.normal(kx2, (B, C, T, H, W), jnp.float32)

    mlp_out, mse = jax.jit(lrn3d_forward)(x1, x2, params)
    mlp_out, mse = jax.block_until_ready((mlp_out, mse))

    mlp_ref, mse_ref = lrn3d_ref(x1, x2, params)
    assert mlp_out.shape == (B, NUM_CLASSES)
    assert jnp.allclose(mlp_out, mlp_ref, rtol=1e-4, atol=1e-5), (mlp_out, mlp_ref)
    assert jnp.allclose(mse, mse_ref, rtol=1e-4, atol=1e-5), (mse, mse_ref)

    print("KERNEL_OK")
</pallas_src>

<mosaic_0001>
module attributes {stable_mosaic.version = 11 : i64} {
  func.func @_lrn3d_kernel(%arg0: i32, %arg1: memref<1x8x256xf32, #tpu.memory_space<vmem>>, %arg2: memref<1x8x256xf32, #tpu.memory_space<vmem>>, %arg3: memref<24x16xf32, #tpu.memory_space<vmem>>, %arg4: memref<24x1xf32, #tpu.memory_space<vmem>>, %arg5: memref<8x10xf32, #tpu.memory_space<vmem>>, %arg6: memref<1x10xf32, #tpu.memory_space<vmem>>, %arg7: memref<1x1x10xf32, #tpu.memory_space<vmem>>, %arg8: memref<1x1x1xf32, #tpu.memory_space<vmem>>) attributes {dimension_semantics = [#tpu.dimension_semantics<parallel>], iteration_bounds = array<i64: 2>, scalar_prefetch = 0 : i64, scratch_operands = 0 : i64, tpu.core_type = #tpu.core_type<tc>, window_params = [{transform_indices = @transform_0, window_bounds = array<i64: 1, 8, 256>}, {transform_indices = @transform_1, window_bounds = array<i64: 1, 8, 256>}, {pipeline_mode = #tpu.pipeline_mode<synchronous>, transform_indices = @transform_2, window_bounds = array<i64: 24, 16>}, {pipeline_mode = #tpu.pipeline_mode<synchronous>, transform_indices = @transform_3, window_bounds = array<i64: 24, 1>}, {pipeline_mode = #tpu.pipeline_mode<synchronous>, transform_indices = @transform_4, window_bounds = array<i64: 8, 10>}, {pipeline_mode = #tpu.pipeline_mode<synchronous>, transform_indices = @transform_5, window_bounds = array<i64: 1, 10>}, {transform_indices = @transform_6, window_bounds = array<i64: 1, 1, 10>}, {transform_indices = @transform_7, window_bounds = array<i64: 1, 1, 1>}]} {
    %c0 = arith.constant 0 : index
    %c0_0 = arith.constant 0 : index
    %c0_1 = arith.constant 0 : index
    %0 = vector.load %arg1[%c0, %c0_0, %c0_1] : memref<1x8x256xf32, #tpu.memory_space<vmem>>, vector<1x8x256xf32>
    %1 = vector.shape_cast %0 : vector<1x8x256xf32> to vector<8x256xf32>
    %c0_2 = arith.constant 0 : index
    %c0_3 = arith.constant 0 : index
    %c0_4 = arith.constant 0 : index
    %2 = vector.load %arg2[%c0_2, %c0_3, %c0_4] : memref<1x8x256xf32, #tpu.memory_space<vmem>>, vector<1x8x256xf32>
    %3 = vector.shape_cast %2 : vector<1x8x256xf32> to vector<8x256xf32>
    %4 = tpu.concatenate %1, %3 in 0 : vector<8x256xf32>, vector<8x256xf32> -> vector<16x256xf32>
    %c0_5 = arith.constant 0 : index
    %c0_6 = arith.constant 0 : index
    %5 = vector.load %arg3[%c0_5, %c0_6] : memref<24x16xf32, #tpu.memory_space<vmem>>, vector<24x16xf32>
    %cst = arith.constant dense<0.000000e+00> : vector<24x256xf32>
    %6 = tpu.matmul %5, %4, %cst {dimension_numbers = #tpu.dot_dimension_numbers<[1], [0], [0], [1], [0, 0, 1, 1], [], []>} : vector<24x16xf32>, vector<16x256xf32>, vector<24x256xf32> -> vector<24x256xf32>
    %c0_7 = arith.constant 0 : index
    %c0_8 = arith.constant 0 : index
    %7 = vector.load %arg4[%c0_7, %c0_8] : memref<24x1xf32, #tpu.memory_space<vmem>>, vector<24x1xf32>
    %8 = vector.broadcast %7 : vector<24x1xf32> to vector<24x256xf32>
    %9 = arith.addf %6, %8 : vector<24x256xf32>
    %cst_9 = arith.constant 0.000000e+00 : f32
    %10 = vector.broadcast %cst_9 : f32 to vector<24x256xf32>
    %11 = arith.maximumf %9, %10 : vector<24x256xf32>
    %12 = vector.extract_strided_slice %11 {offsets = [0, 0], sizes = [8, 256], strides = [1, 1]} : vector<24x256xf32> to vector<8x256xf32>
    %13 = vector.extract_strided_slice %11 {offsets = [8, 0], sizes = [8, 256], strides = [1, 1]} : vector<24x256xf32> to vector<8x256xf32>
    %14 = vector.extract_strided_slice %11 {offsets = [16, 0], sizes = [8, 256], strides = [1, 1]} : vector<24x256xf32> to vector<8x256xf32>
    %15 = arith.subf %12, %14 : vector<8x256xf32>
    %16 = arith.mulf %15, %15 : vector<8x256xf32>
    %17 = vector.shape_cast %16 : vector<8x256xf32> to vector<1x8x256xf32>
    %cst_10 = arith.constant dense<0.000000e+00> : vector<1xf32>
    %18 = vector.multi_reduction <add>, %17, %cst_10 [1, 2] : vector<1x8x256xf32> to vector<1xf32>
    %19 = vector.shape_cast %18 : vector<1xf32> to vector<1x1x1xf32>
    %20 = vector.extract %19[0, 0, 0] : f32 from vector<1x1x1xf32>
    %21 = vector.broadcast %20 : f32 to vector<1x1xf32>
    %22 = vector.shape_cast %21 : vector<1x1xf32> to vector<1x1x1xf32>
    %c0_11 = arith.constant 0 : index
    %c0_12 = arith.constant 0 : index
    %c0_13 = arith.constant 0 : index
    %23 = vector.load %arg8[%c0_11, %c0_12, %c0_13] : memref<1x1x1xf32, #tpu.memory_space<vmem>>, vector<1x1x1xf32>
    tpu.vector_store %arg8[%c0_11, %c0_12, %c0_13], %22 {strides = array<i32>} : memref<1x1x1xf32, #tpu.memory_space<vmem>>, vector<1x1x1xf32>,
    %cst_14 = arith.constant dense<0xFF800000> : vector<8xf32>
    %24 = vector.multi_reduction <maximumf>, %13, %cst_14 [1] : vector<8x256xf32> to vector<8xf32>
    %25 = vector.shape_cast %24 : vector<8xf32> to vector<8x1xf32>
    %c0_15 = arith.constant 0 : index
    %c0_16 = arith.constant 0 : index
    %26 = vector.load %arg5[%c0_15, %c0_16] : memref<8x10xf32, #tpu.memory_space<vmem>>, vector<8x10xf32>
    %27 = vector.broadcast %25 : vector<8x1xf32> to vector<8x10xf32>
    %28 = arith.mulf %26, %27 : vector<8x10xf32>
    %cst_17 = arith.constant dense<0.000000e+00> : vector<10xf32>
    %29 = vector.multi_reduction <add>, %28, %cst_17 [0] : vector<8x10xf32> to vector<10xf32>
    %30 = vector.shape_cast %29 : vector<10xf32> to vector<1x10xf32>
    %c0_18 = arith.constant 0 : index
    %c0_19 = arith.constant 0 : index
    %31 = vector.load %arg6[%c0_18, %c0_19] : memref<1x10xf32, #tpu.memory_space<vmem>>, vector<1x10xf32>
    %32 = arith.addf %30, %31 : vector<1x10xf32>
    %33 = vector.shape_cast %32 : vector<1x10xf32> to vector<1x1x10xf32>
    %c0_20 = arith.constant 0 : index
    %c0_21 = arith.constant 0 : index
    %c0_22 = arith.constant 0 : index
    %34 = vector.load %arg7[%c0_20, %c0_21, %c0_22] : memref<1x1x10xf32, #tpu.memory_space<vmem>>, vector<1x1x10xf32>
    tpu.vector_store %arg7[%c0_20, %c0_21, %c0_22], %33 {strides = array<i32>} : memref<1x1x10xf32, #tpu.memory_space<vmem>>, vector<1x1x10xf32>,
    return
  }
  func.func @transform_0(%arg0: i32) -> (i32, i32, i32) {
    %c0_i32 = arith.constant 0 : i32
    %c0_i32_0 = arith.constant 0 : i32
    %c0_i32_1 = arith.constant 0 : i32
    return %arg0, %c0_i32, %c0_i32_0 : i32, i32, i32
  }
  func.func @transform_1(%arg0: i32) -> (i32, i32, i32) {
    %c0_i32 = arith.constant 0 : i32
    %c0_i32_0 = arith.constant 0 : i32
    %c0_i32_1 = arith.constant 0 : i32
    return %arg0, %c0_i32, %c0_i32_0 : i32, i32, i32
  }
  func.func @transform_2(%arg0: i32) -> (i32, i32) {
    %c0_i32 = arith.constant 0 : i32
    %c0_i32_0 = arith.constant 0 : i32
    %c0_i32_1 = arith.constant 0 : i32
    return %c0_i32, %c0_i32_0 : i32, i32
  }
  func.func @transform_3(%arg0: i32) -> (i32, i32) {
    %c0_i32 = arith.constant 0 : i32
    %c0_i32_0 = arith.constant 0 : i32
    %c0_i32_1 = arith.constant 0 : i32
    return %c0_i32, %c0_i32_0 : i32, i32
  }
  func.func @transform_4(%arg0: i32) -> (i32, i32) {
    %c0_i32 = arith.constant 0 : i32
    %c0_i32_0 = arith.constant 0 : i32
    %c0_i32_1 = arith.constant 0 : i32
    return %c0_i32, %c0_i32_0 : i32, i32
  }
  func.func @transform_5(%arg0: i32) -> (i32, i32) {
    %c0_i32 = arith.constant 0 : i32
    %c0_i32_0 = arith.constant 0 : i32
    %c0_i32_1 = arith.constant 0 : i32
    return %c0_i32, %c0_i32_0 : i32, i32
  }
  func.func @transform_6(%arg0: i32) -> (i32, i32, i32) {
    %c0_i32 = arith.constant 0 : i32
    %c0_i32_0 = arith.constant 0 : i32
    %c0_i32_1 = arith.constant 0 : i32
    return %arg0, %c0_i32, %c0_i32_0 : i32, i32, i32
  }
  func.func @transform_7(%arg0: i32) -> (i32, i32, i32) {
    %c0_i32 = arith.constant 0 : i32
    %c0_i32_0 = arith.constant 0 : i32
    %c0_i32_1 = arith.constant 0 : i32
    return %arg0, %c0_i32, %c0_i32_0 : i32, i32, i32
  }
}

</mosaic_0001>

<bundles_post_ra>
// kernel: lrn3d_forward.1
= control target key start
LH: loop header
LB: loop body
LE: loop exit
PB: predicated region body
PF: predicated region fallthrough
CT: control target
= control target key end

     0   :  { %13 = vsyncpa [#allocation3], 0  ;;  %s833_s0 = inlined_call_operand.vmem [shape: f32[2,8,256], index: 0, kind: input, shape index: {}]   ;;  %s834_s1 = inlined_call_operand.vmem [shape: f32[2,8,256], index: 1, kind: input, shape index: {}]   ;;  %s835_s2 = inlined_call_operand.vmem [shape: f32[24,16], index: 2, kind: input, shape index: {}]   ;;  %s836_s3 = inlined_call_operand.vmem [shape: f32[24,1], index: 3, kind: input, shape index: {}]   ;;  %s837_s4 = inlined_call_operand.vmem [shape: f32[8,10], index: 4, kind: input, shape index: {}]   ;;  %s838_s5 = inlined_call_operand.vmem [shape: f32[1,10], index: 5, kind: input, shape index: {}]   ;;  %s839_s6 = inlined_call_operand.hbm [shape: f32[2,1,10], index: 6, kind: output, shape index: {0}]   ;;  %s840_s7 = inlined_call_operand.vmem [shape: f32[2,1,1], index: 7, kind: output, shape index: {1}]  }
   0x1   :  { %15 = vsyncpa [#allocation3 + $0x1], 0  ;;  %s708_s24 = smov 0   ;;  %s710_s25 = smov 0  }
   0x2   :  { %s712_s26 = smov 0   ;;  %s714_s27 = smov 0  }
   0x3 LB: > { %s729_s28 = sadd.s32 4294967295, %s665_s27   ;;  %s537_s29 = sadd.s32 4294967294, %s665_s27   ;;  %s665_s27 = sphi %s714_s27, %s846_s27   ;;  %s661_s26 = sphi %s712_s26, %s845_s26   ;;  %s657_s25 = sphi %s710_s25, %s844_s25   ;;  %s653_s24 = sphi %s708_s24, %s843_s24  }
   0x4   : > { %s733_s30 = sadd.s32 1, %s665_s27   ;;  %s164_s8 = sadd.s32 1, %s661_s26 }
   0x5   : > { %s161_s9 = ssub.s32 %s665_s27, %s733_s30  ;;  %p174_p0 = scmp.ne.s32.totalorder %s661_s26, %s657_s25 }
   0x6   : > { %p162_p1 = scmp.eq.s32.totalorder %s161_s9, 0  ;;  %p175_p2 = scmp.eq.s32.totalorder %s729_s28, 1 }
   0x7   : > { %p180_p3 = scmp.ne.s32.totalorder %s657_s25, %s653_s24  ;;  %p181_p4 = scmp.eq.s32.totalorder %s537_s29, 1 }
   0x8   : > { %s744_s10 = scalar_select %p162_p1, %s661_s26, %s164_s8  }
   0x9   : > { %p746_p5 = por %p175_p2, %p174_p0  ;;  %p750_p6 = por %p181_p4, %p180_p3 }
   0xa   : > { %p540_p7 = scmp.ge.s32.totalorder %s665_s27, 1  ;;  %p253_p8 = scmp.lt.s32.totalorder %s665_s27, 3 }
   0xc   : > { %p254_p9 = pnand %p540_p7, %p253_p8 }
   0xd   : > { %p292_p10 = scmp.lt.s32.totalorder (!%p254_p9), %s729_s28, 1  ;;  %s285_s22 = sand.u32 (!%p254_p9), 1, %s657_s25  }
   0xe   : > { %257 = sbr.rel (%p254_p9) target bundleno = 357 (0x165), region = 44  ;;  %s444_s8 = scalar_lea.hbm (!%p254_p9), %s839_s6, %s729_s28 }
   0xf   : > { %s286_s14 = scalar_lea.vmem (!%p254_p9), [#allocation2], %s285_s22  ;;  %s448_s16 = sshll.u32 (!%p254_p9), %s444_s8, 4  ;;  %s449_s16 = int_to_ptr.hbm [resolvable:$true] %s448_s16 }
  0x10   : > { %s446_s15 = sshll.u32 (!%p254_p9), %s286_s14, 4  ;;  %s623_s23 = scalar_lea.hbm (!%p254_p9), %s839_s6, 2  ;;  %s447_s15 = int_to_ptr.vmem [resolvable:$true] %s446_s15 }
  0x13   : > { %v667_v0 = vmov 0   ;;  %v312_v1 = vld [vmem:[%s836_s3] sm:$0xff]  ;;  %v313_v2 = vld [vmem:[%s836_s3 + $0x8] sm:$0xff]  ;;  %s764_s17 = scalar_select %p292_p10, %s729_s28, 1  ;;  %vm330_vm0 = vcmask 130048   ;;  %v314_v9 = vld [vmem:[%s836_s3 + $0x10] sm:$0xff] }
  0x14   : > { %601 = vset.pattern.permute.xlu0 %v667_v0  ;;  %602 = vset.pattern.permute.xlu1 %v667_v0  ;;  %v310_v7 = vld [vmem:[%s835_s2 + $0x8] sm:$0xff]  ;;  %v309_v8 = vld [vmem:[%s835_s2] sm:$0xff]  ;;  %v311_v10 = vld [vmem:[%s835_s2 + $0x10] sm:$0xff]  ;;  %vm420_vm1 = vcmask 80896   ;;  %vm430_vm2 = vcmask 73728   ;;  %s433_s28 = scalar_lea.sflag [#allocation3], %s285_s22 }
  0x15   : > { %317 = vperm.xlu0 %601, %v312_v1   ;;  %322 = vperm.xlu1 %602, %v313_v2   ;;  %s553_s18 = sshll.u32 %s764_s17, 4  ;;  %v418_v38 = vld [vmem:[%s837_s4] sm:$0xff] }
  0x16   : > { %s301_s21 = scalar_lea.vmem %s834_s1, %s553_s18  ;;  %s296_s29 = scalar_lea.vmem %s833_s0, %s553_s18  ;;  %v428_v49 = vld [vmem:[%s838_s5] sm:$0x1] }
  0x17   : > { %v307_v3 = vld [vmem:[%s301_s21] sm:$0xff]  ;;  %v308_v4 = vld [vmem:[%s301_s21 + $0x8] sm:$0xff]  ;;  %s617_s18 = sshra.s32 %s449_s16, 4  ;;  %s618_s18 = int_to_ptr.hbm [resolvable:$true] %s617_s18 }
  0x18   : > { %v305_v5 = vld [vmem:[%s296_s29] sm:$0xff]  ;;  %555 = vmatpush.msra.mxu2 %v307_v3  ;;  %557 = vmatpush.msra.mxu3 %v308_v4  ;;  %v306_v6 = vld [vmem:[%s296_s29 + $0x8] sm:$0xff]  ;;  %s619_s19 = scalar_lea.hbm %s618_s18, 1  ;;  %p624_p0 = scmp.lt.s32.totalorder %s618_s18, %s839_s6 }
  0x19   : > { %354 = vmatpush.msra.mxu0 %v307_v3  ;;  %380 = vmatpush.msra.mxu1 %v308_v4  ;;  %p620_p11 = scmp.ne.s32.totalorder %s618_s18, %s619_s19  ;;  %p625_p1 = scmp.lt.s32.totalorder %s623_s23, %s619_s19 }
  0x1a   : > { %556 = vmatpush.msra.mxu2 %v305_v5  ;;  %558 = vmatpush.msra.mxu3 %v306_v6 }
  0x1b   : > { %546 = vmatmul.msk.f32.vlgmr.msra.gmra.mxu2 %vm330_vm0, %v310_v7  ;;  %549 = vmatmul.msk.f32.vlgmr.msra.gmra.mxu3 %vm330_vm0, %v310_v7  ;;  %p621_p12 = pnand %p620_p11, %p746_p5  ;;  %p626_p2 = por %p625_p1, %p624_p0 }
  0x1c   : > { %355 = vmatpush.msra.mxu0 %v305_v5  ;;  %381 = vmatpush.msra.mxu1 %v306_v6 }
  0x1d   : > { %545 = vmatmul.msk.f32.vlgmr.msra.gmra.mxu0 %vm330_vm0, %v309_v8  ;;  %548 = vmatmul.msk.f32.vlgmr.msra.gmra.mxu1 %vm330_vm0, %v309_v8  ;;  %p622_p13 = pneg %p621_p12 }
  0x1e   : > { %327 = vperm.xlu0 %601, %v314_v9  }
  0x1f   : > { %p627_p3 = pnand %p626_p2, %p622_p13 }
  0x23   : > { %547 = vmatmul.msk.f32.gmra.mxu2 %vm330_vm0, %v311_v10  ;;  %550 = vmatmul.msk.f32.gmra.mxu3 %vm330_vm0, %v311_v10 }
  0x87   : > { %v318_v11 = vpop.permute.xlu0 %317  ;;  %v323_v12 = vpop.permute.xlu1 %322 }
  0x90   : > { %v328_v22 = vpop.permute.xlu0 %327 }
  0x9a   : > { %v357_v19 = vpop.f32.mrf.mxu0  ;;  %v383_v20 = vpop.f32.mrf.mxu1 }
  0x9b   : > { %v358_v23 = vadd.f32 %v357_v19, %v318_v11  ;;  %v384_v24 = vadd.f32 %v383_v20, %v318_v11 }
  0x9d   : > { %v392_v29 = vmax.f32 %v358_v23, 0.0  ;;  %v393_v30 = vmax.f32 %v384_v24, 0.0 }
  0x9e   : > { %v360_v13 = vpop.f32.mrf.mxu2  ;;  %v386_v14 = vpop.f32.mrf.mxu3 }
  0x9f   : > { %v361_v15 = vadd.f32 %v360_v13, %v323_v12  ;;  %v387_v16 = vadd.f32 %v386_v14, %v323_v12 }
  0xa1   : > { %v394_v17 = vmax.f32 %v361_v15, 0.0  ;;  %v395_v18 = vmax.f32 %v387_v16, 0.0 }
  0xa3   : > { %v415_v21 = vmax.f32 %v394_v17, %v395_v18 }
  0xa5   : > { %416 = vmax.xlane.f32.xlu2 %v415_v21 }
  0xa6   : > { %v363_v25 = vpop.f32.mrf.mxu2  ;;  %v389_v26 = vpop.f32.mrf.mxu3 }
  0xa7   : > { %v364_v27 = vadd.f32 %v363_v25, %v328_v22  ;;  %v390_v28 = vadd.f32 %v389_v26, %v328_v22 }
  0xa9   : > { %v396_v31 = vmax.f32 %v364_v27, 0.0  ;;  %v397_v32 = vmax.f32 %v390_v28, 0.0 }
  0xab   : > { %v398_v33 = vsub.f32 %v392_v29, %v396_v31  ;;  %v399_v34 = vsub.f32 %v393_v30, %v397_v32 }
  0xad   : > { %v400_v35 = vmul.f32 %v398_v33, %v398_v33  ;;  %v401_v36 = vmul.f32 %v399_v34, %v399_v34 }
  0xaf   : > { %v402_v37 = vadd.f32 %v401_v36, %v400_v35 }
  0xb1   : > { %403 = vadd.xlane.f32.xlu1 %v402_v37 }
 0x118   : > { %v417_v39 = vpop.xlane.xlu2 %416 }
 0x119   : > { %v419_v40 = vmul.f32 %v418_v38, %v417_v39 }
 0x11b   : > { %v421_v41 = vsel %vm420_vm1, %v419_v40, 0.0 }
 0x11c   : > { %v422_v42 = vrot.slane %v421_v41, 4 }
 0x11e   : > { %v423_v43 = vadd.f32 %v422_v42, %v421_v41 }
 0x120   : > { %v424_v44 = vrot.slane %v423_v43, 2 }
 0x122   : > { %v425_v45 = vadd.f32 %v424_v44, %v423_v43 }
 0x124   : > { %v426_v46 = vrot.slane %v425_v45, 1  ;;  %v404_v47 = vpop.xlane.xlu1 %403 }
 0x125   : > { %v405_v48 = vrot.slane %v404_v47, 4 }
 0x126   : > { %v427_v50 = vadd.f32 %v426_v46, %v425_v45 }
 0x127   : > { %v406_v51 = vadd.f32 %v405_v48, %v404_v47 }
 0x128   : > { %v429_v52 = vadd.f32 %v428_v49, %v427_v50 }
 0x129   : > { %v407_v53 = vrot.slane %v406_v51, 2 }
 0x12a   : > { %431 = vst.msk [vmem:[%s286_s14] sm:$0x1] %vm430_vm2, %v429_v52 }
 0x12b   : > { %v408_v54 = vadd.f32 %v407_v53, %v406_v51 }
 0x12c   : > { %630 = shalt.err (!%p627_p3)
}
 0x12d   : > { %561 = dma.vmem_to_hbm [thread:$0]  (%p746_p5), %s447_s15, 16, %s449_s16, %s433_s28   ;;  %v409_v55 = vrot.slane %v408_v54, 1  ;;  %vm413_vm3 = vcmask 0  }
 0x12e   : > { %s304_s13 = scalar_lea.vmem %s840_s7, %s764_s17 }
 0x12f   : > { %v410_v56 = vadd.f32 %v409_v55, %v408_v54 }
 0x131   : > { %559 = vpush %v410_v56 }
 0x162   : > { %s560_s14 = spop %559 }
 0x163   : > { %v412_v57 = vstv %s560_s14 }
 0x164   : > { %414 = vst.msk [vmem:[%s304_s13] sm:$0x1] %vm413_vm3, %v412_v57 }
 0x165 PF: > { %p567_p4 = scmp.ge.s32.totalorder %s665_s27, 2  ;;  %s463_s18 = sand.u32 1, %s653_s24  }
 0x166   : > { %s464_s11 = scalar_lea.sflag [#allocation3], %s463_s18 }
 0x167   : > { %p564_p7 = pnand %p567_p4, %p750_p6 }
 0x169   : > { %p565_p5 = pneg %p564_p7 }
 0x16b   : > { %648 = dma.done.wait (%p565_p5), %s464_s11, 16  }
 0x16c   : > { %650 = vsyncadd (%p565_p5), %s464_s11, 4294967280  ;;  %p18_p8 = scmp.ge.s32.totalorder %s733_s30, 4   ;;  %s843_s24 = smov %s657_s25 }
 0x16d   : > { %s844_s25 = smov %s661_s26  ;;  %s845_s26 = smov %s744_s10 }
 0x16e   : > { %s846_s27 = smov %s733_s30  ;;  %20 = sbr.rel (!%p18_p8) target bundleno = 3 (0x3), region = 94 }
 0x173   :  { %475 = vsyncpa [#allocation3], 1 }
 0x174   :  { %477 = vsyncpa [#allocation3 + $0x1], 1 }

</bundles_post_ra>
